<compile_context>
chip_gen: v7x
topology: tpu7x:2x2x1
jax: 0.10.0
libtpu: 0.0.40
codegen_flags: <defaults>
</compile_context>

<pallas_src>
import math
import numpy as np
import jax
import jax.numpy as jnp
from jax.scipy.special import logsumexp
from jax.experimental import pallas as pl
from jax.experimental.pallas import tpu as pltpu


# ----------------------------------------------------------------------------- #
# Pallas kernel 1: fused transition linear + per-row grouped LOG-softmax
# ----------------------------------------------------------------------------- #
def transition_log_softmax_pallas(embs, w_t, b_t, d_hidden, *,
                                  tm_max=256, out_dtype=jnp.float32):
    """embs: (B, T, D);  w_t: (D, H*H) (already transposed);  b_t: (H*H,).

    Returns log-softmax transition matrices (B, T, H, H) (softmax over the last dim).

    tm_max: 256 keeps the resident set inside v7x's 64 MiB VMEM at realistic D/H;
            raise to 512 on v6e/v5e (128 MiB VMEM).  out_dtype=bfloat16 halves the
            dominant HBM write if downstream tolerates ~3-digit log-prob precision.
    """
    B, T, D = embs.shape
    H = d_hidden
    HH = H * H
    HHp = pl.cdiv(HH, 128) * 128            # lane-dense (multiple of 128) output width
    N = B * T
    # Row tile: as big as allowed but aim for >= 2 grid steps (v7x megacore split),
    # 8-aligned.  The grid handles the ragged tail (no host-side pad of x).
    tm = min(tm_max, max(8, 8 * pl.cdiv(pl.cdiv(N, 2), 8)))
    grid_m = pl.cdiv(N, tm)
    # TODO(synk): for very large H*H on v7x, add a second grid axis over group-aligned
    # HH column tiles (with per-group max) instead of shrinking tm further.

    x = embs.reshape(N, D).astype(jnp.bfloat16)          # bf16 MXU operand, no row pad
    if HHp == HH:                                        # already lane-dense: no pad/slice
        w = w_t.astype(jnp.bfloat16)
        b = b_t.astype(jnp.float32).reshape(1, HH)
    else:
        w = jnp.zeros((D, HHp), jnp.bfloat16).at[:, :HH].set(w_t.astype(jnp.bfloat16))
        b = jnp.full((1, HHp), -1e30, jnp.float32).at[0, :HH].set(b_t.astype(jnp.float32))
    # NOTE: in a training loop, hoist the padded w/b (and gdn/gup below) out of the
    # per-step path; they only depend on the parameters / static shapes.

    # Small group-indicator matrices (replace an O(H^4) block-diagonal matrix):
    #   gdn (HHp, H) bf16: sums exp(logits) within each H-wide group (padded lanes -> 0)
    #   gup (H, HHp) f32 : broadcasts the per-group log-denominator back to its lanes
    lane = jnp.arange(HHp)
    grp = jnp.minimum(lane // H, H - 1)
    valid = lane < HH
    gdn = ((grp[:, None] == jnp.arange(H)[None, :]) & valid[:, None]).astype(jnp.bfloat16)
    gup = (jnp.arange(H)[:, None] == grp[None, :]).astype(jnp.float32)

    def kernel(x_ref, w_ref, b_ref, gdn_ref, gup_ref, o_ref):
        # x: (tm, D) bf16, w: (D, HHp) bf16 -> f32 logits (padded lanes ~ -1e30)
        logits = jnp.dot(x_ref[...], w_ref[...],
                         preferred_element_type=jnp.float32) + b_ref[...]
        m = jnp.max(logits, axis=-1, keepdims=True)           # per-row stabilizer
        shifted = logits - m                                   # (tm, HHp)
        e = jnp.exp(shifted)
        # per-group sums via a tiny bf16 indicator matmul, accumulated in f32
        gsum = jnp.dot(e.astype(jnp.bfloat16), gdn_ref[...],
                       preferred_element_type=jnp.float32)     # (tm, H)
        # log on the SMALL (tm, H) group sums (EUP work / H); clamp guards the case
        # where an entire group underflowed under the per-row max (no +/-inf output).
        logz = jnp.log(jnp.maximum(gsum, 1e-37))               # (tm, H)
        denom = jnp.dot(logz, gup_ref[...],
                        preferred_element_type=jnp.float32)    # broadcast back (tm, HHp)
        o_ref[...] = (shifted - denom).astype(o_ref.dtype)

    out_bytes = 4 if out_dtype == jnp.float32 else 2
    cost = pl.CostEstimate(
        flops=2 * N * HHp * (D + 2 * H),
        transcendentals=N * (HHp + H),
        bytes_accessed=(N * D * 2 + D * HHp * 2 + HHp * 4
                        + HHp * H * 2 + H * HHp * 4 + N * HHp * out_bytes))

    def build(single_buffer_invariants):
        def const_spec(shape):
            zmap = lambda i, _s=shape: (0,) * len(_s)
            if single_buffer_invariants:
                # Grid-invariant operands: never re-fetched, so one buffer is enough.
                return pl.BlockSpec(shape, zmap, pipeline_mode=pl.Buffered(1))
            return pl.BlockSpec(shape, zmap)

        return pl.pallas_call(
            kernel,
            out_shape=jax.ShapeDtypeStruct((N, HHp), out_dtype),
            grid_spec=pltpu.PrefetchScalarGridSpec(
                num_scalar_prefetch=0,
                grid=(grid_m,),
                in_specs=[
                    pl.BlockSpec((tm, D), lambda i: (i, 0)),
                    const_spec((D, HHp)),
                    const_spec((1, HHp)),
                    const_spec((HHp, H)),
                    const_spec((H, HHp)),
                ],
                out_specs=pl.BlockSpec((tm, HHp), lambda i: (i, 0)),
            ),
            compiler_params=pltpu.CompilerParams(
                dimension_semantics=("parallel",),
                # 48 MiB: safe on v7x (64 MiB physical); raise to ~96 MiB on v5e/v6e.
                vmem_limit_bytes=48 * 1024 * 1024),
            cost_estimate=cost,
        )

    try:
        out = build(single_buffer_invariants=True)(x, w, b, gdn, gup)
    except Exception:
        # TODO(synk): pl.Buffered(1) single-buffering not supported by this jax build;
        # fall back to default double-buffering of the invariant operands.
        out = build(single_buffer_invariants=False)(x, w, b, gdn, gup)

    if HHp != HH:
        out = out[:, :HH]
    return out.reshape(B, T, H, H)


# ----------------------------------------------------------------------------- #
# Pallas kernel 2: emission log-evidence
#   evidence[b,t,h] = sum_s logsumexp_o( log_emiss[b,s,h,o] + log_obs[b,t,s,o] )
#                   = sum_s [ log(max_o obs) + log( sum_o emiss * obs / max_o obs ) ]
# Observation probabilities are consumed directly (no host-side log / transpose).
# ----------------------------------------------------------------------------- #
def emission_evidence_pallas(emiss_probs, obs_probs):
    """emiss_probs: (B, S, H, O);  obs_probs: (B, T, S, O)  ->  (B, T, H) float32."""
    B, S, H, O = emiss_probs.shape
    T = obs_probs.shape[1]
    Hp = pl.cdiv(H, 128) * 128              # lane-dense output width

    # Free reshape (contiguous, no transpose / extra HBM round trip); the 1e-30 floor
    # guards all-zero observation rows (would otherwise give -inf max -> NaN weights).
    obs_flat = jnp.maximum(obs_probs.astype(jnp.float32), 1e-30).reshape(B, T, S * O)
    # Emission transposed to (B, S, O, H) and lane-padded with ones (keeps log finite);
    # small tensor, cheap host-side prep.
    ep = jnp.transpose(emiss_probs.astype(jnp.float32), (0, 1, 3, 2))   # (B, S, O, H)
    if Hp != H:
        ep = jnp.pad(ep, ((0, 0), (0, 0), (0, 0), (0, Hp - H)), constant_values=1.0)

    def kernel(obs_ref, ep_ref, out_ref):
        ob = obs_ref[0]                                       # (T, S*O) f32
        acc = jnp.zeros((T, Hp), jnp.float32)
        shift = jnp.zeros((T, 1), jnp.float32)
        for s in range(S):                                    # S is small -> unrolled
            obs_s = ob[:, s * O:(s + 1) * O]                  # (T, O)
            mbx = jnp.max(obs_s, axis=-1, keepdims=True)      # (T, 1), strictly > 0
            wgt = obs_s * pl.reciprocal(mbx, approx=True)     # stabilized weights in [0,1]
            # one well-shaped MXU matmul per source: (T, O) @ (O, Hp), N = Hp >= 128
            p = jnp.dot(wgt, ep_ref[0, s],
                        preferred_element_type=jnp.float32)   # (T, Hp), >= min(emiss) > 0
            acc = acc + jnp.log(p)
            shift = shift + jnp.log(mbx)
        out_ref[0, :, :] = acc + shift                        # lane-dense (Hp) full store

    cost = pl.CostEstimate(
        flops=2 * B * S * T * O * Hp,
        transcendentals=B * S * T * (Hp + 2),
        bytes_accessed=obs_flat.size * 4 + ep.size * 4 + B * T * Hp * 4)

    out = pl.pallas_call(
        kernel,
        out_shape=jax.ShapeDtypeStruct((B, T, Hp), jnp.float32),
        grid_spec=pltpu.PrefetchScalarGridSpec(
            num_scalar_prefetch=0,
            grid=(B,),                                        # >= 2 steps for B >= 2
            in_specs=[
                pl.BlockSpec((1, T, S * O), lambda b: (b, 0, 0)),
                pl.BlockSpec((1, S, O, Hp), lambda b: (b, 0, 0, 0)),
            ],
            out_specs=pl.BlockSpec((1, T, Hp), lambda b: (b, 0, 0)),
        ),
        compiler_params=pltpu.CompilerParams(
            dimension_semantics=("parallel",),
            vmem_limit_bytes=48 * 1024 * 1024),
        cost_estimate=cost,
    )(obs_flat, ep)
    return out[:, :, :H] if Hp != H else out


# ----------------------------------------------------------------------------- #
# Sparse-CHMM helper math (elementwise)
# TODO(synk): prob_scaling / entity_emiss_{diag,nondiag,o} are external helpers not
# provided with the module; the forms below are reconstructions (piecewise power
# scaling; rows 1: of the emission prior sum to 1 by construction).
# ----------------------------------------------------------------------------- #
def prob_scaling(x, p, e1, e2):
    lower = 0.5 * (x / p) ** e1
    upper = 1.0 - 0.5 * ((1.0 - x) / (1.0 - p)) ** e2
    return jnp.where(x < p, lower, upper)


def entity_emiss_diag(x):
    return x


def _split_frac(x, tp, exp_term):
    lower = 1.0 - 0.5 * (x / tp) ** exp_term
    upper = 0.5 * ((1.0 - x) / (1.0 - tp)) ** exp_term
    return jnp.where(x < tp, lower, upper)


def entity_emiss_o(x, n_lbs, tp, exp_term):
    return (1.0 - x) * _split_frac(x, tp, exp_term)


def entity_emiss_nondiag(x, n_lbs, tp, exp_term):
    return (1.0 - x) * (1.0 - _split_frac(x, tp, exp_term)) / (n_lbs - 2)


# ----------------------------------------------------------------------------- #
# Full SparseCHMM forward (add_wxor_lut=False, disable_dirichlet=False)
# ----------------------------------------------------------------------------- #
def sparse_chmm_forward(params, cfg, emb, obs, seq_lengths,
                        normalize_observation=True, sample_emiss=False,
                        apply_ratio_decay=False):
    B, T, S, O = obs.shape
    H = cfg["d_hidden"]
    assert O == cfg["d_obs"] and S == cfg["n_src"]
    max_len = int(np.max(np.asarray(seq_lengths)))
    assert max_len == T, "demo assumes seq_lengths.max() == obs time dim (as the torch code does)"

    # ---------------- neural module: transition log-probs (Pallas kernel 1) ------
    log_trans = transition_log_softmax_pallas(
        emb, params["W_trans"].T, params["b_trans"], H)                       # (B,T,H,H)

    # ---------------- neural module: Dirichlet base params ------------------------
    emb0 = emb[:, 0, :]
    conc_o2o = jax.nn.sigmoid(emb0 @ params["W_2o"].T + params["b_2o"])        # (B, S)
    conc_e2e = (emb0 @ params["W_2e"].T + params["b_2e"]).reshape(B, S, -1)    # (B, S, O-1)
    conc_e2e_norm = jax.nn.softmax(conc_e2e, axis=-2)                          # softmax over sources
    conc_e2e_scale = prob_scaling(conc_e2e_norm, 1.0 / S,
                                  cfg["diag_exp_t1"], cfg["diag_exp_t2"])
    conc_l2l = conc_e2e_scale                                                  # reliability_level == 'label'

    ratio = cfg["nondiag_split_ratio"] * (cfg["nondiag_split_decay"] if apply_ratio_decay else 1.0)
    split_point = ratio / O

    diag_v = entity_emiss_diag(conc_l2l)                                       # (B, S, O-1)
    nond_v = jax.lax.stop_gradient(
        entity_emiss_nondiag(conc_l2l, O, split_point, cfg["nondiag_exp"]))
    o_v = entity_emiss_o(conc_l2l, O, split_point, cfg["nondiag_exp"])

    row0 = jnp.concatenate(
        [conc_o2o[..., None],
         jnp.broadcast_to(((1.0 - conc_o2o) / (O - 1))[..., None], (B, S, O - 1))],
        axis=-1)                                                               # (B, S, O)
    eye_low = jnp.eye(O - 1, dtype=bool)
    rest = jnp.where(eye_low, diag_v[..., :, None], nond_v[..., :, None])       # (B, S, O-1, O-1)
    lower = jnp.concatenate([o_v[..., None], rest], axis=-1)                    # (B, S, O-1, O)
    diric_params = jnp.concatenate([row0[..., None, :], lower], axis=-2)        # (B, S, O, O)

    ranged = diric_params * cfg["conc_range"] + cfg["conc_base"]
    # TODO(synk): Dirichlet rsample (sample_emiss=True) is stochastic; deterministic
    # normalization (sample_emiss=False branch of the torch code) is used here.
    emiss_probs = ranged / ranged.sum(axis=-1, keepdims=True)
    log_emiss = jnp.log(emiss_probs)                                           # (B, S, O, O)

    # ---------------- observation normalization (glue) ---------------------------
    if normalize_observation:
        # NOTE: matches the reference exactly — it compares integer argmax labels
        # against 1e-6, which is effectively "label == 0".
        lbs = jnp.argmax(obs, axis=-1)                       # (B, T, S)
        entity_idx = lbs.sum(axis=-1) > 1e-6                 # (B, T)
        no_entity_idx = lbs <= 1e-6                          # (B, T, S)
        no_obs_src_idx = entity_idx[..., None] & no_entity_idx
        sub = jnp.full((O,), 0.99 / O, jnp.float32).at[0].set(0.01)
        obs = jnp.where(no_obs_src_idx[..., None], sub, obs)

    # ---------------- emission log-evidence (Pallas kernel 2) --------------------
    log_emiss_evidence = emission_evidence_pallas(emiss_probs, obs)            # (B, T, H)

    # ---------------- forward-backward (sequential recursion via lax.scan) -------
    log_state_priors = jax.nn.log_softmax(params["state_priors"], axis=-1)
    ev_T = jnp.swapaxes(log_emiss_evidence, 0, 1)            # (T, B, H)
    lt_T = jnp.swapaxes(log_trans, 0, 1)                     # (T, B, H, H)

    la0 = log_state_priors[None, :] + ev_T[0]
    la0 = la0 - logsumexp(la0, axis=-1, keepdims=True)

    def alpha_step(prev, xs):
        ev_t, lt_t = xs
        la = ev_t + logsumexp(prev[:, :, None] + lt_t, axis=-2)
        la = la - logsumexp(la, axis=-1, keepdims=True)
        return la, la

    _, alpha_rest = jax.lax.scan(alpha_step, la0, (ev_T[1:], lt_T[1:]))
    log_alpha = jnp.swapaxes(jnp.concatenate([la0[None], alpha_rest], axis=0), 0, 1)  # (B,T,H)

    beta_last = jnp.zeros((B, H), jnp.float32)

    def beta_step(nxt, xs):
        ev_t, lt_t = xs
        bta = logsumexp(lt_t + (ev_t + nxt)[:, None, :], axis=-1)
        return bta, bta

    _, beta_rest = jax.lax.scan(beta_step, beta_last,
                                (ev_T[:T - 1], lt_T[:T - 1]), reverse=True)
    log_beta = jnp.swapaxes(jnp.concatenate([beta_rest, beta_last[None]], axis=0), 0, 1)
    shifts = jnp.asarray(seq_lengths) - T
    log_beta = jax.vmap(lambda xb, s: jnp.roll(xb, s, axis=0))(log_beta, shifts)

    # ---------------- expected complete log likelihood ---------------------------
    log_gamma_un = log_alpha + log_beta
    log_gamma = log_gamma_un - logsumexp(log_gamma_un, axis=-1, keepdims=True)

    xi = (log_trans[:, 1:, :, :] + log_alpha[:, :-1, :, None]
          + (log_emiss_evidence[:, 1:, :] + log_beta[:, 1:, :])[:, :, None, :])   # (B,T-1,H,H)
    stab = logsumexp(xi.reshape(B, T - 1, -1), axis=-1).reshape(B, T - 1, 1, 1)
    log_xi = xi - stab

    log_prior = jnp.mean(
        jnp.sum(jnp.exp(log_gamma[:, 0, :]) * log_state_priors[None, :], axis=-1))

    sl = jnp.asarray(seq_lengths)
    log_tran_bt = jnp.sum(jnp.exp(log_xi) * log_trans[:, 1:, :, :], axis=(-2, -1))  # (B, T-1)
    mask_tr = jnp.arange(T - 1)[None, :] < (sl - 1)[:, None]
    log_tran = jnp.mean(jnp.sum(jnp.where(mask_tr, log_tran_bt, 0.0), axis=-1))

    log_emis_bt = jnp.sum(jnp.exp(log_gamma) * log_emiss_evidence, axis=-1)         # (B, T)
    mask_em = jnp.arange(T)[None, :] < sl[:, None]
    log_emis = jnp.mean(jnp.sum(jnp.where(mask_em, log_emis_bt, 0.0), axis=-1))

    log_likelihood = log_prior + log_tran + log_emis
    return log_likelihood, (log_trans, log_emiss)


# ----------------------------------------------------------------------------- #
# deterministic parameter init (shapes from the module's __init__)
# ----------------------------------------------------------------------------- #
def init_params(key, d_emb, n_src, n_lbs, d_hidden):
    def xavier(k, out_f, in_f):
        lim = math.sqrt(6.0 / (in_f + out_f))
        return jax.random.uniform(k, (out_f, in_f), jnp.float32, -lim, lim)

    def bias(k, out_f, in_f):
        lim = 1.0 / math.sqrt(in_f)
        return jax.random.uniform(k, (out_f,), jnp.float32, -lim, lim)

    ks = jax.random.split(key, 6)
    params = {
        "W_trans": xavier(ks[0], d_hidden * d_hidden, d_emb),
        "b_trans": bias(ks[1], d_hidden * d_hidden, d_emb),
        "W_2o": xavier(ks[2], n_src, d_emb),
        "b_2o": bias(ks[3], n_src, d_emb),
        "W_2e": xavier(ks[4], n_src * (n_lbs - 1), d_emb),
        "b_2e": bias(ks[5], n_src * (n_lbs - 1), d_emb),
    }
    priors = jnp.full((d_hidden,), 0.001, jnp.float32).at[0].set(1.0)
    params["state_priors"] = jnp.log(priors)
    return params


if __name__ == "__main__":
    B, T, S, O, D = 2, 8, 4, 5, 32        # batch, seq, n_src, d_obs(=n_lbs=d_hidden), d_emb
    cfg = dict(n_src=S, d_obs=O, d_hidden=O, d_emb=D,
               diag_exp_t1=1.5, diag_exp_t2=2.0,
               nondiag_exp=1.0, nondiag_split_ratio=1.0, nondiag_split_decay=0.5,
               conc_base=1.0, conc_range=99.0)

    key = jax.random.PRNGKey(0)
    kparam, kemb, kobs = jax.random.split(key, 3)
    params = init_params(kparam, D, S, O, O)

    emb = jax.random.normal(kemb, (B, T, D), jnp.float32)
    labels = jax.random.randint(kobs, (B, T, S), 0, O)
    obs = jax.nn.one_hot(labels, O, dtype=jnp.float32) * 0.9 + 0.1 / O   # soft one-hot observations
    seq_lengths = np.array([T, T - 2], dtype=np.int32)

    ll, (log_trans, log_emiss) = sparse_chmm_forward(
        params, cfg, emb, obs, seq_lengths,
        normalize_observation=True, sample_emiss=False, apply_ratio_decay=False)

    jax.block_until_ready(ll)
    jax.block_until_ready(log_trans)
    jax.block_until_ready(log_emiss)
    assert np.isfinite(float(ll)), "log-likelihood is not finite"
    assert log_trans.shape == (B, T, O, O) and log_emiss.shape == (B, S, O, O)
    assert bool(jnp.all(jnp.isfinite(log_trans))), "log_trans contains non-finite values"
    print("KERNEL_OK")
</pallas_src>

<mosaic_0001>
module attributes {stable_mosaic.version = 11 : i64} {
  func.func @kernel(%arg0: i32, %arg1: memref<8x32xbf16, #tpu.memory_space<vmem>>, %arg2: memref<32x128xbf16, #tpu.memory_space<vmem>>, %arg3: memref<1x128xf32, #tpu.memory_space<vmem>>, %arg4: memref<128x5xbf16, #tpu.memory_space<vmem>>, %arg5: memref<5x128xf32, #tpu.memory_space<vmem>>, %arg6: memref<8x128xf32, #tpu.memory_space<vmem>>) attributes {dimension_semantics = [#tpu.dimension_semantics<parallel>], iteration_bounds = array<i64: 2>, scalar_prefetch = 0 : i64, scratch_operands = 0 : i64, tpu.core_type = #tpu.core_type<tc>, window_params = [{transform_indices = @transform_0, window_bounds = array<i64: 8, 32>}, {pipeline_mode = #tpu.pipeline_mode<synchronous>, transform_indices = @transform_1, window_bounds = array<i64: 32, 128>}, {pipeline_mode = #tpu.pipeline_mode<synchronous>, transform_indices = @transform_2, window_bounds = array<i64: 1, 128>}, {pipeline_mode = #tpu.pipeline_mode<synchronous>, transform_indices = @transform_3, window_bounds = array<i64: 128, 5>}, {pipeline_mode = #tpu.pipeline_mode<synchronous>, transform_indices = @transform_4, window_bounds = array<i64: 5, 128>}, {transform_indices = @transform_5, window_bounds = array<i64: 8, 128>}]} {
    %c0 = arith.constant 0 : index
    %c0_0 = arith.constant 0 : index
    %0 = vector.load %arg1[%c0, %c0_0] : memref<8x32xbf16, #tpu.memory_space<vmem>>, vector<8x32xbf16>
    %c0_1 = arith.constant 0 : index
    %c0_2 = arith.constant 0 : index
    %1 = vector.load %arg2[%c0_1, %c0_2] : memref<32x128xbf16, #tpu.memory_space<vmem>>, vector<32x128xbf16>
    %cst = arith.constant dense<0.000000e+00> : vector<8x128xf32>
    %2 = tpu.matmul %0, %1, %cst {dimension_numbers = #tpu.dot_dimension_numbers<[1], [0], [0], [1], [0, 0, 1, 1], [], []>} : vector<8x32xbf16>, vector<32x128xbf16>, vector<8x128xf32> -> vector<8x128xf32>
    %c0_3 = arith.constant 0 : index
    %c0_4 = arith.constant 0 : index
    %3 = vector.load %arg3[%c0_3, %c0_4] : memref<1x128xf32, #tpu.memory_space<vmem>>, vector<1x128xf32>
    %4 = vector.broadcast %3 : vector<1x128xf32> to vector<8x128xf32>
    %5 = arith.addf %2, %4 : vector<8x128xf32>
    %cst_5 = arith.constant dense<0xFF800000> : vector<8xf32>
    %6 = vector.multi_reduction <maximumf>, %5, %cst_5 [1] : vector<8x128xf32> to vector<8xf32>
    %7 = vector.shape_cast %6 : vector<8xf32> to vector<8x1xf32>
    %8 = vector.broadcast %7 : vector<8x1xf32> to vector<8x128xf32>
    %9 = arith.subf %5, %8 : vector<8x128xf32>
    %10 = math.exp %9 : vector<8x128xf32>
    %11 = arith.truncf %10 : vector<8x128xf32> to vector<8x128xbf16>
    %c0_6 = arith.constant 0 : index
    %c0_7 = arith.constant 0 : index
    %12 = vector.load %arg4[%c0_6, %c0_7] : memref<128x5xbf16, #tpu.memory_space<vmem>>, vector<128x5xbf16>
    %cst_8 = arith.constant dense<0.000000e+00> : vector<8x5xf32>
    %13 = tpu.matmul %11, %12, %cst_8 {dimension_numbers = #tpu.dot_dimension_numbers<[1], [0], [0], [1], [0, 0, 1, 1], [], []>} : vector<8x128xbf16>, vector<128x5xbf16>, vector<8x5xf32> -> vector<8x5xf32>
    %cst_9 = arith.constant 9.99999991E-38 : f32
    %14 = vector.broadcast %cst_9 : f32 to vector<8x5xf32>
    %15 = arith.maximumf %13, %14 : vector<8x5xf32>
    %16 = math.log %15 : vector<8x5xf32>
    %c0_10 = arith.constant 0 : index
    %c0_11 = arith.constant 0 : index
    %17 = vector.load %arg5[%c0_10, %c0_11] : memref<5x128xf32, #tpu.memory_space<vmem>>, vector<5x128xf32>
    %cst_12 = arith.constant dense<0.000000e+00> : vector<8x128xf32>
    %18 = tpu.matmul %16, %17, %cst_12 {dimension_numbers = #tpu.dot_dimension_numbers<[1], [0], [0], [1], [0, 0, 1, 1], [], []>} : vector<8x5xf32>, vector<5x128xf32>, vector<8x128xf32> -> vector<8x128xf32>
    %19 = arith.subf %9, %18 : vector<8x128xf32>
    %c0_13 = arith.constant 0 : index
    %c0_14 = arith.constant 0 : index
    %20 = vector.load %arg6[%c0_13, %c0_14] : memref<8x128xf32, #tpu.memory_space<vmem>>, vector<8x128xf32>
    tpu.vector_store %arg6[%c0_13, %c0_14], %19 {strides = array<i32>} : memref<8x128xf32, #tpu.memory_space<vmem>>, vector<8x128xf32>,
    return
  }
  func.func @transform_0(%arg0: i32) -> (i32, i32) {
    %c0_i32 = arith.constant 0 : i32
    %c0_i32_0 = arith.constant 0 : i32
    return %arg0, %c0_i32 : i32, i32
  }
  func.func @transform_1(%arg0: i32) -> (i32, i32) {
    %c0_i32 = arith.constant 0 : i32
    %c0_i32_0 = arith.constant 0 : i32
    %c0_i32_1 = arith.constant 0 : i32
    return %c0_i32, %c0_i32_0 : i32, i32
  }
  func.func @transform_2(%arg0: i32) -> (i32, i32) {
    %c0_i32 = arith.constant 0 : i32
    %c0_i32_0 = arith.constant 0 : i32
    %c0_i32_1 = arith.constant 0 : i32
    return %c0_i32, %c0_i32_0 : i32, i32
  }
  func.func @transform_3(%arg0: i32) -> (i32, i32) {
    %c0_i32 = arith.constant 0 : i32
    %c0_i32_0 = arith.constant 0 : i32
    %c0_i32_1 = arith.constant 0 : i32
    return %c0_i32, %c0_i32_0 : i32, i32
  }
  func.func @transform_4(%arg0: i32) -> (i32, i32) {
    %c0_i32 = arith.constant 0 : i32
    %c0_i32_0 = arith.constant 0 : i32
    %c0_i32_1 = arith.constant 0 : i32
    return %c0_i32, %c0_i32_0 : i32, i32
  }
  func.func @transform_5(%arg0: i32) -> (i32, i32) {
    %c0_i32 = arith.constant 0 : i32
    %c0_i32_0 = arith.constant 0 : i32
    return %arg0, %c0_i32 : i32, i32
  }
}

module attributes {stable_mosaic.version = 11 : i64} {
  func.func @kernel(%arg0: i32, %arg1: memref<8x32xbf16, #tpu.memory_space<vmem>>, %arg2: memref<32x128xbf16, #tpu.memory_space<vmem>>, %arg3: memref<1x128xf32, #tpu.memory_space<vmem>>, %arg4: memref<128x5xbf16, #tpu.memory_space<vmem>>, %arg5: memref<5x128xf32, #tpu.memory_space<vmem>>, %arg6: memref<8x128xf32, #tpu.memory_space<vmem>>) attributes {dimension_semantics = [#tpu.dimension_semantics<parallel>], iteration_bounds = array<i64: 2>, scalar_prefetch = 0 : i64, scratch_operands = 0 : i64, tpu.core_type = #tpu.core_type<tc>, window_params = [{transform_indices = @transform_0, window_bounds = array<i64: 8, 32>}, {pipeline_mode = #tpu.pipeline_mode<synchronous>, transform_indices = @transform_1, window_bounds = array<i64: 32, 128>}, {pipeline_mode = #tpu.pipeline_mode<synchronous>, transform_indices = @transform_2, window_bounds = array<i64: 1, 128>}, {pipeline_mode = #tpu.pipeline_mode<synchronous>, transform_indices = @transform_3, window_bounds = array<i64: 128, 5>}, {pipeline_mode = #tpu.pipeline_mode<synchronous>, transform_indices = @transform_4, window_bounds = array<i64: 5, 128>}, {transform_indices = @transform_5, window_bounds = array<i64: 8, 128>}]} {
    %c0 = arith.constant 0 : index
    %c0_0 = arith.constant 0 : index
    %0 = vector.load %arg1[%c0, %c0_0] : memref<8x32xbf16, #tpu.memory_space<vmem>>, vector<8x32xbf16>
    %c0_1 = arith.constant 0 : index
    %c0_2 = arith.constant 0 : index
    %1 = vector.load %arg2[%c0_1, %c0_2] : memref<32x128xbf16, #tpu.memory_space<vmem>>, vector<32x128xbf16>
    %cst = arith.constant dense<0.000000e+00> : vector<8x128xf32>
    %2 = tpu.matmul %0, %1, %cst {dimension_numbers = #tpu.dot_dimension_numbers<[1], [0], [0], [1], [0, 0, 1, 1], [], []>} : vector<8x32xbf16>, vector<32x128xbf16>, vector<8x128xf32> -> vector<8x128xf32>
    %c0_3 = arith.constant 0 : index
    %c0_4 = arith.constant 0 : index
    %3 = vector.load %arg3[%c0_3, %c0_4] : memref<1x128xf32, #tpu.memory_space<vmem>>, vector<1x128xf32>
    %4 = vector.broadcast %3 : vector<1x128xf32> to vector<8x128xf32>
    %5 = arith.addf %2, %4 : vector<8x128xf32>
    %cst_5 = arith.constant dense<0xFF800000> : vector<8xf32>
    %6 = vector.multi_reduction <maximumf>, %5, %cst_5 [1] : vector<8x128xf32> to vector<8xf32>
    %7 = vector.shape_cast %6 : vector<8xf32> to vector<8x1xf32>
    %8 = vector.broadcast %7 : vector<8x1xf32> to vector<8x128xf32>
    %9 = arith.subf %5, %8 : vector<8x128xf32>
    %10 = math.exp %9 : vector<8x128xf32>
    %11 = arith.truncf %10 : vector<8x128xf32> to vector<8x128xbf16>
    %c0_6 = arith.constant 0 : index
    %c0_7 = arith.constant 0 : index
    %12 = vector.load %arg4[%c0_6, %c0_7] : memref<128x5xbf16, #tpu.memory_space<vmem>>, vector<128x5xbf16>
    %cst_8 = arith.constant dense<0.000000e+00> : vector<8x5xf32>
    %13 = tpu.matmul %11, %12, %cst_8 {dimension_numbers = #tpu.dot_dimension_numbers<[1], [0], [0], [1], [0, 0, 1, 1], [], []>} : vector<8x128xbf16>, vector<128x5xbf16>, vector<8x5xf32> -> vector<8x5xf32>
    %cst_9 = arith.constant 9.99999991E-38 : f32
    %14 = vector.broadcast %cst_9 : f32 to vector<8x5xf32>
    %15 = arith.maximumf %13, %14 : vector<8x5xf32>
    %16 = math.log %15 : vector<8x5xf32>
    %c0_10 = arith.constant 0 : index
    %c0_11 = arith.constant 0 : index
    %17 = vector.load %arg5[%c0_10, %c0_11] : memref<5x128xf32, #tpu.memory_space<vmem>>, vector<5x128xf32>
    %cst_12 = arith.constant dense<0.000000e+00> : vector<8x128xf32>
    %18 = tpu.matmul %16, %17, %cst_12 {dimension_numbers = #tpu.dot_dimension_numbers<[1], [0], [0], [1], [0, 0, 1, 1], [], []>} : vector<8x5xf32>, vector<5x128xf32>, vector<8x128xf32> -> vector<8x128xf32>
    %19 = arith.subf %9, %18 : vector<8x128xf32>
    %c0_13 = arith.constant 0 : index
    %c0_14 = arith.constant 0 : index
    %20 = vector.load %arg6[%c0_13, %c0_14] : memref<8x128xf32, #tpu.memory_space<vmem>>, vector<8x128xf32>
    tpu.vector_store %arg6[%c0_13, %c0_14], %19 {strides = array<i32>} : memref<8x128xf32, #tpu.memory_space<vmem>>, vector<8x128xf32>,
    return
  }
  func.func @transform_0(%arg0: i32) -> (i32, i32) {
    %c0_i32 = arith.constant 0 : i32
    %c0_i32_0 = arith.constant 0 : i32
    return %arg0, %c0_i32 : i32, i32
  }
  func.func @transform_1(%arg0: i32) -> (i32, i32) {
    %c0_i32 = arith.constant 0 : i32
    %c0_i32_0 = arith.constant 0 : i32
    %c0_i32_1 = arith.constant 0 : i32
    return %c0_i32, %c0_i32_0 : i32, i32
  }
  func.func @transform_2(%arg0: i32) -> (i32, i32) {
    %c0_i32 = arith.constant 0 : i32
    %c0_i32_0 = arith.constant 0 : i32
    %c0_i32_1 = arith.constant 0 : i32
    return %c0_i32, %c0_i32_0 : i32, i32
  }
  func.func @transform_3(%arg0: i32) -> (i32, i32) {
    %c0_i32 = arith.constant 0 : i32
    %c0_i32_0 = arith.constant 0 : i32
    %c0_i32_1 = arith.constant 0 : i32
    return %c0_i32, %c0_i32_0 : i32, i32
  }
  func.func @transform_4(%arg0: i32) -> (i32, i32) {
    %c0_i32 = arith.constant 0 : i32
    %c0_i32_0 = arith.constant 0 : i32
    %c0_i32_1 = arith.constant 0 : i32
    return %c0_i32, %c0_i32_0 : i32, i32
  }
  func.func @transform_5(%arg0: i32) -> (i32, i32) {
    %c0_i32 = arith.constant 0 : i32
    %c0_i32_0 = arith.constant 0 : i32
    return %arg0, %c0_i32 : i32, i32
  }
}

</mosaic_0001>

<bundles_post_ra>
// kernel: tpu_custom_call.1
= control target key start
LH: loop header
LB: loop body
LE: loop exit
PB: predicated region body
PF: predicated region fallthrough
CT: control target
= control target key end

     0   :  { %10 = vsyncpa [#allocation3], 0  ;;  %s915_s0 = inlined_call_operand.vmem [shape: bf16[16,32], index: 0, kind: input, shape index: {}]   ;;  %s916_s1 = inlined_call_operand.vmem [shape: bf16[32,128], index: 1, kind: input, shape index: {}]   ;;  %s917_s2 = inlined_call_operand.vmem [shape: f32[1,128], index: 2, kind: input, shape index: {}]   ;;  %s918_s3 = inlined_call_operand.vmem [shape: bf16[128,5], index: 3, kind: input, shape index: {}]   ;;  %s919_s4 = inlined_call_operand.vmem [shape: f32[5,128], index: 4, kind: input, shape index: {}]   ;;  %s920_s5 = inlined_call_operand.hbm [shape: f32[16,128], index: 5, kind: output, shape index: {}]  }
   0x1   :  { %12 = vsyncpa [#allocation3 + $0x1], 0  ;;  %s779_s18 = smov 0   ;;  %s781_s19 = smov 0  }
   0x2   :  { %s783_s20 = smov 0   ;;  %s785_s21 = smov 0  }
   0x3 LB: > { %s800_s22 = sadd.s32 4294967295, %s744_s21   ;;  %s556_s23 = sadd.s32 4294967294, %s744_s21   ;;  %s744_s21 = sphi %s785_s21, %s926_s21   ;;  %s740_s20 = sphi %s783_s20, %s925_s20   ;;  %s736_s19 = sphi %s781_s19, %s924_s19   ;;  %s732_s18 = sphi %s779_s18, %s923_s18  }
   0x4   : > { %s804_s24 = sadd.s32 1, %s744_s21   ;;  %s135_s25 = sadd.s32 1, %s740_s20 }
   0x5   : > { %s132_s26 = ssub.s32 %s744_s21, %s804_s24  ;;  %p145_p0 = scmp.ne.s32.totalorder %s740_s20, %s736_s19 }
   0x6   : > { %p133_p1 = scmp.eq.s32.totalorder %s132_s26, 0  ;;  %p146_p2 = scmp.eq.s32.totalorder %s800_s22, 1 }
   0x7   : > { %p151_p3 = scmp.ne.s32.totalorder %s736_s19, %s732_s18  ;;  %p152_p4 = scmp.eq.s32.totalorder %s556_s23, 1 }
   0x8   : > { %s815_s27 = scalar_select %p133_p1, %s740_s20, %s135_s25  }
   0x9   : > { %p817_p5 = por %p146_p2, %p145_p0  ;;  %p821_p6 = por %p152_p4, %p151_p3 }
   0xa   : > { %p559_p7 = scmp.ge.s32.totalorder %s744_s21, 1  ;;  %p189_p8 = scmp.lt.s32.totalorder %s744_s21, 3 }
   0xc   : > { %p190_p9 = pnand %p559_p7, %p189_p8 }
   0xd   : > { %v668_v0 = vld [vmem:[%s916_s1] sm:$0xff] (!%p190_p9)   ;;  %v746_v1 = vmov (!%p190_p9), 0.0   ;;  %v669_v2 = vld [vmem:[%s916_s1 + $0x8] sm:$0xff] (!%p190_p9)   ;;  %vm747_vm0 = vmmov (!%p190_p9), 0   ;;  %p216_p10 = scmp.lt.s32.totalorder (!%p190_p9), %s800_s22, 1  ;;  %vm245_vm1 = vcmask (!%p190_p9), 261120  }
   0xe   : > { %193 = sbr.rel (%p190_p9) target bundleno = 854 (0x356), region = 40  ;;  %594 = vmatprep.subr.bf16.mxu0 (!%p190_p9), %v746_v1  ;;  %602 = vmatprep.subr.bf16.mxu1 (!%p190_p9), %v746_v1  ;;  %v670_v4 = vld [vmem:[%s918_s3] sm:$0xff] (!%p190_p9)   ;;  %v671_v5 = vld [vmem:[%s918_s3 + $0x8] sm:$0xff] (!%p190_p9)   ;;  %v672_v6 = vld [vmem:[%s918_s3 + $0x10] sm:$0xff] (!%p190_p9)   ;;  %vm407_vm2 = vcmask (!%p190_p9), 1044480   ;;  %vm403_vm3 = vcmask (!%p190_p9), 39936  }
   0xf   : > { %595 = vmatpush3.bf16.msra.mxu0 (!%p190_p9), %v668_v0  ;;  %598 = vmatprep.mubr.msk.bf16.mxu0 (!%p190_p9), %vm747_vm0, %v746_v1  ;;  %v673_v7 = vld [vmem:[%s918_s3 + $0x18] sm:$0xff] (!%p190_p9)   ;;  %v562_v8 = vld [vmem:[%s917_s2] ss:$0 sm:$0xff] (!%p190_p9)  ;;  %v675_v15 = vld [vmem:[%s918_s3 + $0x28] sm:$0xff] (!%p190_p9)   ;;  %s213_s23 = sand.u32 (!%p190_p9), 1, %s736_s19   ;;  %s577_s26 = sshll.u32 (!%p190_p9), %s800_s22, 7 }
  0x10   : > { %596 = vmatprep.subr.bf16.mxu0 (!%p190_p9), %v746_v1  ;;  %618 = vmatprep.mubr.msk.bf16.mxu1 (!%p190_p9), %vm747_vm0, %v746_v1  ;;  %v674_v14 = vld [vmem:[%s918_s3 + $0x20] sm:$0xff] (!%p190_p9)   ;;  %v676_v16 = vld [vmem:[%s918_s3 + $0x30] sm:$0xff] (!%p190_p9)   ;;  %v677_v17 = vld [vmem:[%s918_s3 + $0x38] sm:$0xff] (!%p190_p9)   ;;  %s560_s25 = sshll.u32 (!%p190_p9), %s213_s23, 3 }
  0x11   : > { %603 = vmatpush3.bf16.msra.mxu1 (!%p190_p9), %v670_v4  ;;  %v402_v23 = vld [vmem:[%s919_s4] sm:$0x1f] (!%p190_p9)  ;;  %s215_s30 = scalar_lea.vmem (!%p190_p9), [#allocation2], %s560_s25 }
  0x12   : > { %604 = vmatprep.subr.bf16.mxu1 (!%p190_p9), %v746_v1  ;;  %s497_s6 = sshll.u32 (!%p190_p9), %s215_s30, 4  ;;  %s875_s6 = int_to_ptr.vmem [resolvable:$true] %s497_s6 }
  0x13   : > { %597 = vmatpush3.bf16.msra.mxu0 (!%p190_p9), %v669_v2  ;;  %s682_s11 = scalar_lea.vmem (!%p190_p9), %s875_s6, 128 }
  0x14   : > { %622 = vmatprep.subr.mxu0 (!%p190_p9), %v746_v1  ;;  %p683_p11 = scmp.ne.s32.totalorder (!%p190_p9), %s875_s6, %s682_s11 }
  0x15   : > { %s217_s9 = scalar_select %p216_p10, %s800_s22, 1  ;;  %605 = vmatpush3.bf16.msra.mxu1 %v671_v5 }
  0x16   : > { %606 = vmatprep.subr.bf16.mxu1 %v746_v1  ;;  %p684_p12 = pnand %p683_p11, %p817_p5  ;;  %s748_s22 = smov [#allocation2]  }
  0x17   : > { %s561_s10 = sshll.u32 %s217_s9, 2  ;;  %s873_s9 = scalar_lea.hbm %s920_s5, %s577_s26 }
  0x18   : > { %s219_s13 = scalar_lea.vmem %s915_s0, %s561_s10  ;;  %s484_s10 = scalar_lea.sflag [#allocation3], %s213_s23 }
  0x19   : > { %v221_v3 = vld [vmem:[%s219_s13] sm:$0xf]  ;;  %607 = vmatpush3.bf16.msra.mxu1 %v672_v6  ;;  %p685_p13 = pneg %p684_p12  ;;  %s686_s12 = sshll.u32 %s748_s22, 4  ;;  %s687_s12 = int_to_ptr.vmem [resolvable:$false] %s686_s12 }
  0x1a   : > { %599 = vmatmul.mubr.msk.bf16.vlgmr.msra.gmra.mrb[0].mxu0 %vm245_vm1, %v221_v3  ;;  %608 = vmatprep.subr.bf16.mxu1 %v746_v1  ;;  %s688_s13 = scalar_lea.vmem %s687_s12, 256  ;;  %p689_p0 = scmp.lt.s32.totalorder %s875_s6, %s687_s12 }
  0x1b   : > { %624 = vmatprep.mubr.msk.f32.mxu0 %vm747_vm0, %v746_v1  ;;  %623 = vmatpush3.msk.msra.mxu0 %vm407_vm2, %v402_v23  ;;  %p690_p1 = scmp.lt.s32.totalorder %s688_s13, %s682_s11 }
  0x1d   : > { %609 = vmatpush3.bf16.msra.mxu1 %v673_v7  ;;  %p691_p2 = por %p690_p1, %p689_p0 }
  0x1e   : > { %610 = vmatprep.subr.bf16.mxu1 %v746_v1 }
  0x1f   : > { %p692_p3 = pnand %p691_p2, %p685_p13 }
  0x21   : > { %611 = vmatpush3.bf16.msra.mxu1 %v674_v14 }
  0x22   : > { %612 = vmatprep.subr.bf16.mxu1 %v746_v1 }
  0x25   : > { %613 = vmatpush3.bf16.msra.mxu1 %v675_v15 }
  0x26   : > { %614 = vmatprep.subr.bf16.mxu1 %v746_v1 }
  0x29   : > { %615 = vmatpush3.bf16.msra.mxu1 %v676_v16 }
  0x2a   : > { %616 = vmatprep.subr.bf16.mxu1 %v746_v1 }
  0x2d   : > { %617 = vmatpush3.bf16.msra.mxu1 %v677_v17 }
  0xed   : > { %v283_v9 = vpop.f32.mrb[0].mxu0 }
  0xee   : > { %v284_v10 = vadd.f32 %v562_v8, %v283_v9  ;;  %v600_v11 = vpop.f32.mrb[1].mxu0 }
  0xef   : > { %v286_v12 = vpop.f32.mrb[2].mxu0 }
  0xf0   : > { %v601_v13 = vpop.f32.mrb[3].mxu0  ;;  %289 = vmax.xlane.f32.xlu0 %v284_v10 }
 0x17d   : > { %v290_v18 = vpop.xlane.xlu0 %289 }
 0x17e   : > { %v291_v19 = vsub.f32 %v284_v10, %v290_v18 }
 0x180   : > { %v292_v20 = vmul.f32 1.442695, %v291_v19 }
 0x182   : > { %678 = vpow2.f32 %v292_v20 }
 0x18c   : > { %v679_v21 = vpop.eup %678 }
 0x18d   : > { %v294_v22 = vpack.c.bf16 %v679_v21, %v679_v21 }
 0x18f   : > { %619 = vmatmul.mubr.bf16.vlgmr.msra.gmra.mrb[0].mxu1 %v294_v22 }
 0x262   : > { %v393_v24 = vpop.f32.mrb[0].mxu1 }
 0x263   : > { %v399_v25 = vmax.f32 %v393_v24, 1e-37  ;;  %v620_v26 = vpop.f32.mrb[1].mxu1 }
 0x264   : > { %v396_v27 = vpop.f32.mrb[2].mxu1 }
 0x265   : > { %680 = vlog2.f32 %v399_v25  ;;  %v621_v28 = vpop.f32.mrb[3].mxu1 }
 0x26f   : > { %v681_v29 = vpop.eup %680 }
 0x270   : > { %v401_v30 = vmul.f32 0.6931472, %v681_v29 }
 0x272   : > { %625 = vmatmul.mubr.msk.f32.vlgmr.msra.gmra.mrb[4].mxu0 %vm403_vm3, %v401_v30 }
 0x345   : > { %v477_v31 = vpop.f32.mrb[4].mxu0 }
 0x346   : > { %v481_v32 = vsub.f32 %v291_v19, %v477_v31  ;;  %v626_v33 = vpop.f32.mrb[5].mxu0 }
 0x348   : > { %482 = vst [vmem:[%s215_s30] sm:$0xff] %v481_v32 }
 0x349   : > { %695 = shalt.err (!%p692_p3)
}
 0x34a   : > { %s696_s14 = scalar_lea.hbm %s873_s9, 128  ;;  %s700_s17 = scalar_lea.hbm %s920_s5, 256 }
 0x34b   : > { %p697_p4 = scmp.ne.s32.totalorder %s873_s9, %s696_s14  ;;  %p701_p9 = scmp.lt.u32.totalorder %s873_s9, %s920_s5 }
 0x34c   : > { %p702_p10 = scmp.lt.u32.totalorder %s700_s17, %s696_s14  ;;  %p704_p12 = scmp.lt.u32.totalorder %s696_s14, %s873_s9 }
 0x34d   : > { %p698_p7 = pnand %p697_p4, %p817_p5 }
 0x34e   : > { %p703_p11 = por %p702_p10, %p701_p9 }
 0x34f   : > { %p699_p8 = pneg %p698_p7 }
 0x350   : > { %p705_p13 = por %p704_p12, %p703_p11 }
 0x352   : > { %p706_p0 = pnand %p705_p13, %p699_p8 }
 0x354   : > { %709 = shalt.err (!%p706_p0)
}
 0x355   : > { %627 = dma.vmem_to_hbm [thread:$0]  (%p817_p5), %s875_s6, 128, %s873_s9, %s484_s10  }
 0x356 PF: > { %p633_p1 = scmp.ge.s32.totalorder %s744_s21, 2  ;;  %s509_s26 = sand.u32 1, %s732_s18  }
 0x357   : > { %s510_s30 = scalar_lea.sflag [#allocation3], %s509_s26 }
 0x358   : > { %p630_p2 = pnand %p633_p1, %p821_p6 }
 0x35a   : > { %727 = dma.done.wait (!%p630_p2), %s510_s30, 128  }
 0x35b   : > { %729 = vsyncadd (!%p630_p2), %s510_s30, 4294967168  ;;  %p15_p3 = scmp.ge.s32.totalorder %s804_s24, 4   ;;  %s923_s18 = smov %s736_s19 }
 0x35c   : > { %s924_s19 = smov %s740_s20  ;;  %s925_s20 = smov %s815_s27 }
 0x35d   : > { %s926_s21 = smov %s804_s24  ;;  %17 = sbr.rel (!%p15_p3) target bundleno = 3 (0x3), region = 75 }
 0x364   :  { %515 = vsyncpa [#allocation3], 1 }
 0x365   :  { %517 = vsyncpa [#allocation3 + $0x1], 1 }

// kernel: tpu_custom_call.1
= control target key start
LH: loop header
LB: loop body
LE: loop exit
PB: predicated region body
PF: predicated region fallthrough
CT: control target
= control target key end

     0   :  { %10 = vsyncpa [#allocation3], 0  ;;  %s915_s0 = inlined_call_operand.vmem [shape: bf16[16,32], index: 0, kind: input, shape index: {}]   ;;  %s916_s1 = inlined_call_operand.vmem [shape: bf16[32,128], index: 1, kind: input, shape index: {}]   ;;  %s917_s2 = inlined_call_operand.vmem [shape: f32[1,128], index: 2, kind: input, shape index: {}]   ;;  %s918_s3 = inlined_call_operand.vmem [shape: bf16[128,5], index: 3, kind: input, shape index: {}]   ;;  %s919_s4 = inlined_call_operand.vmem [shape: f32[5,128], index: 4, kind: input, shape index: {}]   ;;  %s920_s5 = inlined_call_operand.hbm [shape: f32[16,128], index: 5, kind: output, shape index: {}]  }
   0x1   :  { %12 = vsyncpa [#allocation3 + $0x1], 0  ;;  %s779_s18 = smov 0   ;;  %s781_s19 = smov 0  }
   0x2   :  { %s783_s20 = smov 0   ;;  %s785_s21 = smov 0  }
   0x3 LB: > { %s800_s22 = sadd.s32 4294967295, %s744_s21   ;;  %s556_s23 = sadd.s32 4294967294, %s744_s21   ;;  %s744_s21 = sphi %s785_s21, %s926_s21   ;;  %s740_s20 = sphi %s783_s20, %s925_s20   ;;  %s736_s19 = sphi %s781_s19, %s924_s19   ;;  %s732_s18 = sphi %s779_s18, %s923_s18  }
   0x4   : > { %s804_s24 = sadd.s32 1, %s744_s21   ;;  %s135_s25 = sadd.s32 1, %s740_s20 }
   0x5   : > { %s132_s26 = ssub.s32 %s744_s21, %s804_s24  ;;  %p145_p0 = scmp.ne.s32.totalorder %s740_s20, %s736_s19 }
   0x6   : > { %p133_p1 = scmp.eq.s32.totalorder %s132_s26, 0  ;;  %p146_p2 = scmp.eq.s32.totalorder %s800_s22, 1 }
   0x7   : > { %p151_p3 = scmp.ne.s32.totalorder %s736_s19, %s732_s18  ;;  %p152_p4 = scmp.eq.s32.totalorder %s556_s23, 1 }
   0x8   : > { %s815_s27 = scalar_select %p133_p1, %s740_s20, %s135_s25  }
   0x9   : > { %p817_p5 = por %p146_p2, %p145_p0  ;;  %p821_p6 = por %p152_p4, %p151_p3 }
   0xa   : > { %p559_p7 = scmp.ge.s32.totalorder %s744_s21, 1  ;;  %p189_p8 = scmp.lt.s32.totalorder %s744_s21, 3 }
   0xc   : > { %p190_p9 = pnand %p559_p7, %p189_p8 }
   0xd   : > { %v668_v0 = vld [vmem:[%s916_s1] sm:$0xff] (!%p190_p9)   ;;  %v746_v1 = vmov (!%p190_p9), 0.0   ;;  %v669_v2 = vld [vmem:[%s916_s1 + $0x8] sm:$0xff] (!%p190_p9)   ;;  %vm747_vm0 = vmmov (!%p190_p9), 0   ;;  %p216_p10 = scmp.lt.s32.totalorder (!%p190_p9), %s800_s22, 1  ;;  %vm245_vm1 = vcmask (!%p190_p9), 261120  }
   0xe   : > { %193 = sbr.rel (%p190_p9) target bundleno = 854 (0x356), region = 40  ;;  %594 = vmatprep.subr.bf16.mxu0 (!%p190_p9), %v746_v1  ;;  %602 = vmatprep.subr.bf16.mxu1 (!%p190_p9), %v746_v1  ;;  %v670_v4 = vld [vmem:[%s918_s3] sm:$0xff] (!%p190_p9)   ;;  %v671_v5 = vld [vmem:[%s918_s3 + $0x8] sm:$0xff] (!%p190_p9)   ;;  %v672_v6 = vld [vmem:[%s918_s3 + $0x10] sm:$0xff] (!%p190_p9)   ;;  %vm407_vm2 = vcmask (!%p190_p9), 1044480   ;;  %vm403_vm3 = vcmask (!%p190_p9), 39936  }
   0xf   : > { %595 = vmatpush3.bf16.msra.mxu0 (!%p190_p9), %v668_v0  ;;  %598 = vmatprep.mubr.msk.bf16.mxu0 (!%p190_p9), %vm747_vm0, %v746_v1  ;;  %v673_v7 = vld [vmem:[%s918_s3 + $0x18] sm:$0xff] (!%p190_p9)   ;;  %v562_v8 = vld [vmem:[%s917_s2] ss:$0 sm:$0xff] (!%p190_p9)  ;;  %v675_v15 = vld [vmem:[%s918_s3 + $0x28] sm:$0xff] (!%p190_p9)   ;;  %s213_s23 = sand.u32 (!%p190_p9), 1, %s736_s19   ;;  %s577_s26 = sshll.u32 (!%p190_p9), %s800_s22, 7 }
  0x10   : > { %596 = vmatprep.subr.bf16.mxu0 (!%p190_p9), %v746_v1  ;;  %618 = vmatprep.mubr.msk.bf16.mxu1 (!%p190_p9), %vm747_vm0, %v746_v1  ;;  %v674_v14 = vld [vmem:[%s918_s3 + $0x20] sm:$0xff] (!%p190_p9)   ;;  %v676_v16 = vld [vmem:[%s918_s3 + $0x30] sm:$0xff] (!%p190_p9)   ;;  %v677_v17 = vld [vmem:[%s918_s3 + $0x38] sm:$0xff] (!%p190_p9)   ;;  %s560_s25 = sshll.u32 (!%p190_p9), %s213_s23, 3 }
  0x11   : > { %603 = vmatpush3.bf16.msra.mxu1 (!%p190_p9), %v670_v4  ;;  %v402_v23 = vld [vmem:[%s919_s4] sm:$0x1f] (!%p190_p9)  ;;  %s215_s30 = scalar_lea.vmem (!%p190_p9), [#allocation2], %s560_s25 }
  0x12   : > { %604 = vmatprep.subr.bf16.mxu1 (!%p190_p9), %v746_v1  ;;  %s497_s6 = sshll.u32 (!%p190_p9), %s215_s30, 4  ;;  %s875_s6 = int_to_ptr.vmem [resolvable:$true] %s497_s6 }
  0x13   : > { %597 = vmatpush3.bf16.msra.mxu0 (!%p190_p9), %v669_v2  ;;  %s682_s11 = scalar_lea.vmem (!%p190_p9), %s875_s6, 128 }
  0x14   : > { %622 = vmatprep.subr.mxu0 (!%p190_p9), %v746_v1  ;;  %p683_p11 = scmp.ne.s32.totalorder (!%p190_p9), %s875_s6, %s682_s11 }
  0x15   : > { %s217_s9 = scalar_select %p216_p10, %s800_s22, 1  ;;  %605 = vmatpush3.bf16.msra.mxu1 %v671_v5 }
  0x16   : > { %606 = vmatprep.subr.bf16.mxu1 %v746_v1  ;;  %p684_p12 = pnand %p683_p11, %p817_p5  ;;  %s748_s22 = smov [#allocation2]  }
  0x17   : > { %s561_s10 = sshll.u32 %s217_s9, 2  ;;  %s873_s9 = scalar_lea.hbm %s920_s5, %s577_s26 }
  0x18   : > { %s219_s13 = scalar_lea.vmem %s915_s0, %s561_s10  ;;  %s484_s10 = scalar_lea.sflag [#allocation3], %s213_s23 }
  0x19   : > { %v221_v3 = vld [vmem:[%s219_s13] sm:$0xf]  ;;  %607 = vmatpush3.bf16.msra.mxu1 %v672_v6  ;;  %p685_p13 = pneg %p684_p12  ;;  %s686_s12 = sshll.u32 %s748_s22, 4  ;;  %s687_s12 = int_to_ptr.vmem [resolvable:$false] %s686_s12 }
  0x1a   : > { %599 = vmatmul.mubr.msk.bf16.vlgmr.msra.gmra.mrb[0].mxu0 %vm245_vm1, %v221_v3  ;;  %608 = vmatprep.subr.bf16.mxu1 %v746_v1  ;;  %s688_s13 = scalar_lea.vmem %s687_s12, 256  ;;  %p689_p0 = scmp.lt.s32.totalorder %s875_s6, %s687_s12 }
  0x1b   : > { %624 = vmatprep.mubr.msk.f32.mxu0 %vm747_vm0, %v746_v1  ;;  %623 = vmatpush3.msk.msra.mxu0 %vm407_vm2, %v402_v23  ;;  %p690_p1 = scmp.lt.s32.totalorder %s688_s13, %s682_s11 }
  0x1d   : > { %609 = vmatpush3.bf16.msra.mxu1 %v673_v7  ;;  %p691_p2 = por %p690_p1, %p689_p0 }
  0x1e   : > { %610 = vmatprep.subr.bf16.mxu1 %v746_v1 }
  0x1f   : > { %p692_p3 = pnand %p691_p2, %p685_p13 }
  0x21   : > { %611 = vmatpush3.bf16.msra.mxu1 %v674_v14 }
  0x22   : > { %612 = vmatprep.subr.bf16.mxu1 %v746_v1 }
  0x25   : > { %613 = vmatpush3.bf16.msra.mxu1 %v675_v15 }
  0x26   : > { %614 = vmatprep.subr.bf16.mxu1 %v746_v1 }
  0x29   : > { %615 = vmatpush3.bf16.msra.mxu1 %v676_v16 }
  0x2a   : > { %616 = vmatprep.subr.bf16.mxu1 %v746_v1 }
  0x2d   : > { %617 = vmatpush3.bf16.msra.mxu1 %v677_v17 }
  0xed   : > { %v283_v9 = vpop.f32.mrb[0].mxu0 }
  0xee   : > { %v284_v10 = vadd.f32 %v562_v8, %v283_v9  ;;  %v600_v11 = vpop.f32.mrb[1].mxu0 }
  0xef   : > { %v286_v12 = vpop.f32.mrb[2].mxu0 }
  0xf0   : > { %v601_v13 = vpop.f32.mrb[3].mxu0  ;;  %289 = vmax.xlane.f32.xlu0 %v284_v10 }
 0x17d   : > { %v290_v18 = vpop.xlane.xlu0 %289 }
 0x17e   : > { %v291_v19 = vsub.f32 %v284_v10, %v290_v18 }
 0x180   : > { %v292_v20 = vmul.f32 1.442695, %v291_v19 }
 0x182   : > { %678 = vpow2.f32 %v292_v20 }
 0x18c   : > { %v679_v21 = vpop.eup %678 }
 0x18d   : > { %v294_v22 = vpack.c.bf16 %v679_v21, %v679_v21 }
 0x18f   : > { %619 = vmatmul.mubr.bf16.vlgmr.msra.gmra.mrb[0].mxu1 %v294_v22 }
 0x262   : > { %v393_v24 = vpop.f32.mrb[0].mxu1 }
 0x263   : > { %v399_v25 = vmax.f32 %v393_v24, 1e-37  ;;  %v620_v26 = vpop.f32.mrb[1].mxu1 }
 0x264   : > { %v396_v27 = vpop.f32.mrb[2].mxu1 }
 0x265   : > { %680 = vlog2.f32 %v399_v25  ;;  %v621_v28 = vpop.f32.mrb[3].mxu1 }
 0x26f   : > { %v681_v29 = vpop.eup %680 }
 0x270   : > { %v401_v30 = vmul.f32 0.6931472, %v681_v29 }
 0x272   : > { %625 = vmatmul.mubr.msk.f32.vlgmr.msra.gmra.mrb[4].mxu0 %vm403_vm3, %v401_v30 }
 0x345   : > { %v477_v31 = vpop.f32.mrb[4].mxu0 }
 0x346   : > { %v481_v32 = vsub.f32 %v291_v19, %v477_v31  ;;  %v626_v33 = vpop.f32.mrb[5].mxu0 }
 0x348   : > { %482 = vst [vmem:[%s215_s30] sm:$0xff] %v481_v32 }
 0x349   : > { %695 = shalt.err (!%p692_p3)
}
 0x34a   : > { %s696_s14 = scalar_lea.hbm %s873_s9, 128  ;;  %s700_s17 = scalar_lea.hbm %s920_s5, 256 }
 0x34b   : > { %p697_p4 = scmp.ne.s32.totalorder %s873_s9, %s696_s14  ;;  %p701_p9 = scmp.lt.u32.totalorder %s873_s9, %s920_s5 }
 0x34c   : > { %p702_p10 = scmp.lt.u32.totalorder %s700_s17, %s696_s14  ;;  %p704_p12 = scmp.lt.u32.totalorder %s696_s14, %s873_s9 }
 0x34d   : > { %p698_p7 = pnand %p697_p4, %p817_p5 }
 0x34e   : > { %p703_p11 = por %p702_p10, %p701_p9 }
 0x34f   : > { %p699_p8 = pneg %p698_p7 }
 0x350   : > { %p705_p13 = por %p704_p12, %p703_p11 }
 0x352   : > { %p706_p0 = pnand %p705_p13, %p699_p8 }
 0x354   : > { %709 = shalt.err (!%p706_p0)
}
 0x355   : > { %627 = dma.vmem_to_hbm [thread:$0]  (%p817_p5), %s875_s6, 128, %s873_s9, %s484_s10  }
 0x356 PF: > { %p633_p1 = scmp.ge.s32.totalorder %s744_s21, 2  ;;  %s509_s26 = sand.u32 1, %s732_s18  }
 0x357   : > { %s510_s30 = scalar_lea.sflag [#allocation3], %s509_s26 }
 0x358   : > { %p630_p2 = pnand %p633_p1, %p821_p6 }
 0x35a   : > { %727 = dma.done.wait (!%p630_p2), %s510_s30, 128  }
 0x35b   : > { %729 = vsyncadd (!%p630_p2), %s510_s30, 4294967168  ;;  %p15_p3 = scmp.ge.s32.totalorder %s804_s24, 4   ;;  %s923_s18 = smov %s736_s19 }
 0x35c   : > { %s924_s19 = smov %s740_s20  ;;  %s925_s20 = smov %s815_s27 }
 0x35d   : > { %s926_s21 = smov %s804_s24  ;;  %17 = sbr.rel (!%p15_p3) target bundleno = 3 (0x3), region = 75 }
 0x364   :  { %515 = vsyncpa [#allocation3], 1 }
 0x365   :  { %517 = vsyncpa [#allocation3 + $0x1], 1 }

</bundles_post_ra>
